<compile_context>
chip_gen: v7x
topology: tpu7x:2x2x1
jax: 0.10.0
libtpu: 0.0.40
codegen_flags: <defaults>
</compile_context>

<pallas_src>
import functools

import jax
import jax.numpy as jnp
from jax.experimental import pallas as pl
from jax.experimental.pallas import tpu as pltpu
import numpy as np


def _yolo_decode_kernel(scale_ref, whmask_ref, off_ref, p_ref, io_ref):
    """Decode one (C, HW_TILE) slab, C = na*no.

    scale_ref  : (C, 1)        f32 VMEM  — stride (xy) / anchor*stride (wh) / 1 (rest)
    whmask_ref : (C, 1)        f32 VMEM  — 1.0 on w/h rows, 0.0 elsewhere
    off_ref    : (C, HW_TILE)  f32 VMEM  — grid_x*stride / grid_y*stride rows, 0 elsewhere
    p_ref      : (C, HW_TILE)  native-dtype VMEM input
    io_ref     : (C, HW_TILE)  f32 VMEM output
    """
    v = p_ref[...].astype(jnp.float32)              # lane-dense load + in-reg cast
    is_wh = whmask_ref[...] > 0.5                   # (C,1) bool, broadcast along lanes

    # One exp per element: exp(v) on wh rows, exp(-v) (for the sigmoid) elsewhere.
    e = jnp.exp(jnp.where(is_wh, v, -v))
    # Exact sigmoid on the non-wh rows (approx reciprocal was not accurate enough).
    t = jnp.where(is_wh, e, 1.0 / (1.0 + e))

    # Affine epilogue, single unmasked full-tile store.
    io_ref[...] = t * scale_ref[...] + off_ref[...]


def _pick_hw_tile(hw, max_hw_tile):
    """Largest multiple of 128 that divides hw and is <= max_hw_tile (else hw)."""
    if hw % 128 != 0:
        return hw
    start = min(hw, max(128, (max_hw_tile // 128) * 128))
    for cand in range(start, 0, -128):
        if hw % cand == 0:
            return cand
    return hw


def yolo_layer_forward(p, anchors, nc, stride, *, max_hw_tile=2048, return_p=True):
    """Inference-mode YOLOLayer.forward.

    Returns (io.view(bs, -1, no), p_permuted) like the PyTorch module
    (p_permuted omitted when return_p=False to save an extra HBM pass).
    """
    bs, ch, ny, nx = p.shape
    anch_np = np.asarray(anchors, dtype=np.float32)
    na = anch_np.shape[0]
    no = nc + 5
    assert ch == na * no, f"channel mismatch: {ch} != {na}*{no}"
    HW = ny * nx
    C = na * no
    s = float(stride)

    HW_TILE = _pick_hw_tile(HW, max_hw_tile)

    # ---- per-row affine constants (built once on host, tiny) --------------
    # scale: stride on xy rows, anchor_vec*stride on wh rows, 1 on obj/cls rows.
    scale_np = np.ones((na, no), np.float32)
    scale_np[:, 0:2] = s
    scale_np[:, 2] = (anch_np[:, 0] / s) * s        # mirror reference rounding
    scale_np[:, 3] = (anch_np[:, 1] / s) * s
    scale = jnp.asarray(scale_np.reshape(C, 1))

    whmask_np = np.zeros((na, no), np.float32)
    whmask_np[:, 2:4] = 1.0
    whmask = jnp.asarray(whmask_np.reshape(C, 1))

    # offset plane: grid_x*stride / grid_y*stride on the xy rows, zero elsewhere.
    xs = np.tile(np.arange(nx, dtype=np.float32), ny)      # x varies fastest
    ys = np.repeat(np.arange(ny, dtype=np.float32), nx)
    off_np = np.zeros((na, no, HW), np.float32)
    off_np[:, 0, :] = xs * s
    off_np[:, 1, :] = ys * s
    off = jnp.asarray(off_np.reshape(C, HW))

    # Lane-dense, native-dtype input (cast to f32 happens in-kernel).
    p3 = p.reshape(bs, C, HW)

    # NOTE: per-block footprint = (1 + out_bytes_factor) * C * HW_TILE plus the
    # small resident constants; re-derive HW_TILE / vmem_limit per generation
    # (v7x: 64 MiB physical VMEM vs 128 MiB on v5e/v6e) for COCO-sized heads.
    io3 = pl.pallas_call(
        _yolo_decode_kernel,
        out_shape=jax.ShapeDtypeStruct((bs, C, HW), jnp.float32),
        grid_spec=pl.GridSpec(
            grid=(bs, HW // HW_TILE),
            in_specs=[
                pl.BlockSpec((C, 1), lambda b, t: (0, 0)),           # scale
                pl.BlockSpec((C, 1), lambda b, t: (0, 0)),           # wh mask
                pl.BlockSpec((C, HW_TILE), lambda b, t: (0, t)),     # offset plane
                pl.BlockSpec((None, C, HW_TILE), lambda b, t: (b, 0, t)),  # p
            ],
            out_specs=pl.BlockSpec((None, C, HW_TILE), lambda b, t: (b, 0, t)),
        ),
        compiler_params=pltpu.CompilerParams(
            dimension_semantics=("parallel", "parallel"),
            vmem_limit_bytes=32 * 1024 * 1024,
        ),
    )(scale, whmask, off, p3)

    # Glue (pure XLA): bring `no` to the minor axis and flatten, mirroring
    # torch's .permute(0,1,3,4,2).contiguous() + .view(bs, -1, no).
    io = jnp.transpose(io3.reshape(bs, na, no, ny, nx), (0, 1, 3, 4, 2))
    io = io.reshape(bs, na * HW, no)

    if not return_p:
        return io, None
    p_perm = jnp.transpose(p.reshape(bs, na, no, ny, nx), (0, 1, 3, 4, 2))
    return io, p_perm


def yolo_layer_reference(p, anchors, nc, stride):
    """Pure-JAX reference mirroring the PyTorch eval-mode forward."""
    bs, ch, ny, nx = p.shape
    na = anchors.shape[0]
    no = nc + 5
    pp = jnp.transpose(p.reshape(bs, na, no, ny, nx), (0, 1, 3, 4, 2))
    ppf = pp.astype(jnp.float32)
    yv, xv = jnp.meshgrid(jnp.arange(ny), jnp.arange(nx), indexing="ij")
    grid = jnp.stack((xv, yv), axis=2).reshape(1, 1, ny, nx, 2).astype(jnp.float32)
    anchor_wh = (jnp.asarray(anchors, jnp.float32) / stride).reshape(1, na, 1, 1, 2)
    xy = (jax.nn.sigmoid(ppf[..., :2]) + grid) * stride
    wh = jnp.exp(ppf[..., 2:4]) * anchor_wh * stride
    rest = jax.nn.sigmoid(ppf[..., 4:])
    io = jnp.concatenate([xy, wh, rest], axis=-1)
    return io.reshape(bs, -1, no), pp


if __name__ == "__main__":
    # Deterministic synthetic config (module __init__ params)
    nc = 3                       # number of classes -> no = 8
    stride = 8
    anchors = jnp.asarray([[10.0, 13.0], [16.0, 30.0], [33.0, 23.0]],
                          dtype=jnp.float32)           # na = 3
    na, no = anchors.shape[0], nc + 5

    key = jax.random.PRNGKey(0)

    # --- case 1: f32 input, bs=2, 16x16 head (single HW tile) -------------
    bs, ny, nx = 2, 16, 16
    x = jax.random.normal(key, (bs, na * no, ny, nx), dtype=jnp.float32)

    io, p_perm = yolo_layer_forward(x, anchors, nc, stride)
    io = jax.block_until_ready(io)
    p_perm = jax.block_until_ready(p_perm)

    io_ref, p_ref = yolo_layer_reference(x, anchors, nc, stride)
    assert io.shape == (bs, na * ny * nx, no)
    assert p_perm.shape == (bs, na, ny, nx, no)
    np.testing.assert_allclose(np.asarray(io), np.asarray(io_ref),
                               rtol=1e-4, atol=1e-4)
    np.testing.assert_array_equal(np.asarray(p_perm), np.asarray(p_ref))

    # --- case 2: bf16 input, bs=1, 32x16 head, forced HW tiling -----------
    bs2, ny2, nx2 = 1, 32, 16
    x2 = jax.random.normal(jax.random.PRNGKey(1),
                           (bs2, na * no, ny2, nx2), dtype=jnp.float32)
    xb = x2.astype(jnp.bfloat16)

    io_b, p_perm_b = yolo_layer_forward(xb, anchors, nc, stride, max_hw_tile=256)
    io_b = jax.block_until_ready(io_b)
    p_perm_b = jax.block_until_ready(p_perm_b)

    io_ref_b, p_ref_b = yolo_layer_reference(xb, anchors, nc, stride)
    assert io_b.shape == (bs2, na * ny2 * nx2, no)
    np.testing.assert_allclose(np.asarray(io_b), np.asarray(io_ref_b),
                               rtol=1e-4, atol=1e-4)
    np.testing.assert_array_equal(np.asarray(p_perm_b.astype(jnp.float32)),
                                  np.asarray(p_ref_b.astype(jnp.float32)))

    # --- io-only path (drops the extra p_perm HBM pass) -------------------
    io_only, _ = yolo_layer_forward(x, anchors, nc, stride, return_p=False)
    io_only = jax.block_until_ready(io_only)
    np.testing.assert_allclose(np.asarray(io_only), np.asarray(io_ref),
                               rtol=1e-4, atol=1e-4)

    print("KERNEL_OK")
</pallas_src>

<mosaic_0001>
module attributes {stable_mosaic.version = 11 : i64} {
  func.func @_yolo_decode_kernel(%arg0: i32, %arg1: i32, %arg2: memref<24x1xf32, #tpu.memory_space<vmem>>, %arg3: memref<24x1xf32, #tpu.memory_space<vmem>>, %arg4: memref<24x256xf32, #tpu.memory_space<vmem>>, %arg5: memref<1x24x256xf32, #tpu.memory_space<vmem>>, %arg6: memref<1x24x256xf32, #tpu.memory_space<vmem>>) attributes {dimension_semantics = [#tpu.dimension_semantics<parallel>, #tpu.dimension_semantics<parallel>], iteration_bounds = array<i64: 2, 1>, scalar_prefetch = 0 : i64, scratch_operands = 0 : i64, tpu.core_type = #tpu.core_type<tc>, window_params = [{pipeline_mode = #tpu.pipeline_mode<synchronous>, transform_indices = @transform_0, window_bounds = array<i64: 24, 1>}, {pipeline_mode = #tpu.pipeline_mode<synchronous>, transform_indices = @transform_1, window_bounds = array<i64: 24, 1>}, {transform_indices = @transform_2, window_bounds = array<i64: 24, 256>}, {transform_indices = @transform_3, window_bounds = array<i64: 1, 24, 256>}, {transform_indices = @transform_4, window_bounds = array<i64: 1, 24, 256>}]} {
    %c0 = arith.constant 0 : index
    %c0_0 = arith.constant 0 : index
    %c0_1 = arith.constant 0 : index
    %0 = vector.load %arg5[%c0, %c0_0, %c0_1] : memref<1x24x256xf32, #tpu.memory_space<vmem>>, vector<1x24x256xf32>
    %1 = vector.shape_cast %0 : vector<1x24x256xf32> to vector<24x256xf32>
    %c0_2 = arith.constant 0 : index
    %c0_3 = arith.constant 0 : index
    %2 = vector.load %arg3[%c0_2, %c0_3] : memref<24x1xf32, #tpu.memory_space<vmem>>, vector<24x1xf32>
    %cst = arith.constant 5.000000e-01 : f32
    %3 = vector.broadcast %cst : f32 to vector<24x1xf32>
    %4 = arith.cmpf ogt, %2, %3 : vector<24x1xf32>
    %cst_4 = arith.constant 0.000000e+00 : f32
    %5 = vector.broadcast %cst_4 : f32 to vector<24x256xf32>
    %6 = arith.subf %5, %1 : vector<24x256xf32>
    %7 = vector.shape_cast %4 : vector<24x1xi1> to vector<24x1xi1>
    %8 = vector.broadcast %7 : vector<24x1xi1> to vector<24x256xi1>
    %9 = arith.select %8, %1, %6 : vector<24x256xi1>, vector<24x256xf32>
    %10 = math.exp %9 : vector<24x256xf32>
    %cst_5 = arith.constant 1.000000e+00 : f32
    %11 = vector.broadcast %cst_5 : f32 to vector<24x256xf32>
    %12 = arith.addf %11, %10 : vector<24x256xf32>
    %cst_6 = arith.constant 1.000000e+00 : f32
    %13 = vector.broadcast %cst_6 : f32 to vector<24x256xf32>
    %14 = arith.divf %13, %12 : vector<24x256xf32>
    %15 = vector.shape_cast %4 : vector<24x1xi1> to vector<24x1xi1>
    %16 = vector.broadcast %15 : vector<24x1xi1> to vector<24x256xi1>
    %17 = arith.select %16, %10, %14 : vector<24x256xi1>, vector<24x256xf32>
    %c0_7 = arith.constant 0 : index
    %c0_8 = arith.constant 0 : index
    %18 = vector.load %arg2[%c0_7, %c0_8] : memref<24x1xf32, #tpu.memory_space<vmem>>, vector<24x1xf32>
    %19 = vector.broadcast %18 : vector<24x1xf32> to vector<24x256xf32>
    %20 = arith.mulf %17, %19 : vector<24x256xf32>
    %c0_9 = arith.constant 0 : index
    %c0_10 = arith.constant 0 : index
    %21 = vector.load %arg4[%c0_9, %c0_10] : memref<24x256xf32, #tpu.memory_space<vmem>>, vector<24x256xf32>
    %22 = arith.addf %20, %21 : vector<24x256xf32>
    %c0_11 = arith.constant 0 : index
    %c0_12 = arith.constant 0 : index
    %c0_13 = arith.constant 0 : index
    %23 = vector.load %arg6[%c0_11, %c0_12, %c0_13] : memref<1x24x256xf32, #tpu.memory_space<vmem>>, vector<1x24x256xf32>
    %24 = vector.shape_cast %23 : vector<1x24x256xf32> to vector<24x256xf32>
    %25 = vector.shape_cast %22 : vector<24x256xf32> to vector<1x24x256xf32>
    tpu.vector_store %arg6[%c0_11, %c0_12, %c0_13], %25 {strides = array<i32>} : memref<1x24x256xf32, #tpu.memory_space<vmem>>, vector<1x24x256xf32>,
    return
  }
  func.func @transform_0(%arg0: i32, %arg1: i32) -> (i32, i32) {
    %c0_i32 = arith.constant 0 : i32
    %c0_i32_0 = arith.constant 0 : i32
    %c0_i32_1 = arith.constant 0 : i32
    return %c0_i32, %c0_i32_0 : i32, i32
  }
  func.func @transform_1(%arg0: i32, %arg1: i32) -> (i32, i32) {
    %c0_i32 = arith.constant 0 : i32
    %c0_i32_0 = arith.constant 0 : i32
    %c0_i32_1 = arith.constant 0 : i32
    return %c0_i32, %c0_i32_0 : i32, i32
  }
  func.func @transform_2(%arg0: i32, %arg1: i32) -> (i32, i32) {
    %c0_i32 = arith.constant 0 : i32
    %c0_i32_0 = arith.constant 0 : i32
    return %c0_i32, %arg1 : i32, i32
  }
  func.func @transform_3(%arg0: i32, %arg1: i32) -> (i32, i32, i32) {
    %c0_i32 = arith.constant 0 : i32
    %c0_i32_0 = arith.constant 0 : i32
    return %arg0, %c0_i32, %arg1 : i32, i32, i32
  }
  func.func @transform_4(%arg0: i32, %arg1: i32) -> (i32, i32, i32) {
    %c0_i32 = arith.constant 0 : i32
    %c0_i32_0 = arith.constant 0 : i32
    return %arg0, %c0_i32, %arg1 : i32, i32, i32
  }
}

</mosaic_0001>

<bundles_post_ra>
// kernel: tpu_custom_call.1
= control target key start
LH: loop header
LB: loop body
LE: loop exit
PB: predicated region body
PF: predicated region fallthrough
CT: control target
= control target key end

     0   :  { %9 = vsyncpa [#allocation3], 0  ;;  %s995_s0 = inlined_call_operand.vmem [shape: f32[24,1], index: 0, kind: input, shape index: {}]   ;;  %s996_s1 = inlined_call_operand.vmem [shape: f32[24,1], index: 1, kind: input, shape index: {}]   ;;  %s997_s2 = inlined_call_operand.vmem [shape: f32[24,256], index: 2, kind: input, shape index: {}]   ;;  %s998_s3 = inlined_call_operand.hbm [shape: f32[2,24,256], index: 3, kind: input, shape index: {}]   ;;  %s999_s4 = inlined_call_operand.hbm [shape: f32[2,24,256], index: 4, kind: output, shape index: {}]  }
   0x1   :  { %11 = vsyncpa [#allocation3 + $0x1], 0 }
   0x2   :  { %12 = vsyncpa [#allocation4], 0 }
   0x3   :  { %14 = vsyncpa [#allocation4 + $0x1], 0  ;;  %s746_s15 = smov 0   ;;  %s748_s16 = smov 0  }
   0x4   :  { %s750_s17 = smov 0   ;;  %s752_s18 = smov 0  }
   0x5   :  { %s754_s19 = smov 0   ;;  %s756_s20 = smov 0  }
   0x6 LB: > { %s493_s21 = sadd.s32 4294967295, %s712_s20   ;;  %s494_s22 = sadd.s32 4294967294, %s712_s20   ;;  %s712_s20 = sphi %s756_s20, %s20_s20   ;;  %s708_s19 = sphi %s754_s19, %s1014_s19   ;;  %s704_s18 = sphi %s752_s18, %s1013_s18   ;;  %s700_s17 = sphi %s750_s17, %s1012_s17   ;;  %s696_s16 = sphi %s748_s16, %s1011_s16   ;;  %s692_s15 = sphi %s746_s15, %s1010_s15  }
   0x7   : > { %s32_s23 = sadd.s32 1, %s708_s19  ;;  %s109_s24 = sadd.s32 1, %s700_s17 }
   0x8   : > { %p34_p0 = scmp.ge.s32.totalorder %s32_s23, 2  ;;  %p116_p1 = scmp.ne.s32.totalorder %s700_s17, %s696_s16 }
   0x9   : > { %p117_p2 = scmp.eq.s32.totalorder %s712_s20, 0  ;;  %p122_p3 = scmp.ne.s32.totalorder %s696_s16, %s692_s15 }
   0xa   : > { %s1016_s23 = smov (%p34_p0, %s32_s23), 0  ;;  %p123_p5 = scmp.eq.s32.totalorder %s493_s21, 0 }
   0xb   : > { %p787_p4 = por %p117_p2, %p116_p1  ;;  %s104_s26 = ssub.s32 %s708_s19, %s1016_s23 }
   0xc   : > { %p148_p6 = scmp.eq.s32.totalorder %s493_s21, 1  ;;  %p107_p7 = scmp.eq.s32.totalorder %s104_s26, 0 }
   0xd   : > { %p793_p8 = por %p123_p5, %p122_p3  ;;  %p154_p10 = scmp.eq.s32.totalorder %s494_s22, 1 }
   0xe   : > { %p797_p9 = por %p148_p6, %p116_p1  ;;  %p519_p13 = scmp.lt.s32.totalorder %s712_s20, 2 }
   0xf   : > { %s802_s29 = scalar_select %p107_p7, %s700_s17, %s109_s24  }
  0x10   : > { %s1003_s28 = scalar_select %p797_p9, 1, 0 }
  0x11   : > { %p804_p11 = por %p154_p10, %p122_p3  ;;  %s189_s5 = sand.u32 1, %s700_s17  }
  0x12   : > { %s503_s6 = smul.u32 48, %s189_s5  ;;  %p814_p0 = pnand %p519_p13, %p787_p4 }
  0x13   : > { %s1004_s30 = scalar_select %p804_p11, 1, 0 }
  0x14   : > { %s504_s7 = smul.u32 768, %s708_s19  ;;  %s193_s12 = scalar_lea.vmem [#allocation2], %s503_s6 }
  0x15   : > { %s202_s13 = sshll.u32 %s193_s12, 4  ;;  %s826_s14 = scalar_lea.sflag [#allocation3], %s189_s5  ;;  %s823_s13 = int_to_ptr.vmem [resolvable:$true] %s202_s13 }
  0x16   : > { %s821_s11 = scalar_lea.hbm %s998_s3, %s504_s7  ;;  %p602_p3 = pneg %p814_p0 }
  0x17   : > { %s600_s21 = scalar_lea.hbm %s821_s11, 768  ;;  %s605_s25 = scalar_lea.hbm %s998_s3, 1536 }
  0x18   : > { %p601_p2 = scmp.ne.s32.totalorder %s821_s11, %s600_s21  ;;  %p606_p6 = scmp.lt.u32.totalorder %s821_s11, %s998_s3 }
  0x19   : > { %p607_p7 = scmp.lt.u32.totalorder %s605_s25, %s600_s21  ;;  %p609_p13 = scmp.lt.u32.totalorder %s600_s21, %s821_s11 }
  0x1a   : > { %p603_p4 = pnand %p602_p3, %p601_p2 }
  0x1b   : > { %p608_p10 = por %p607_p7, %p606_p6 }
  0x1c   : > { %p604_p5 = pneg %p603_p4 }
  0x1d   : > { %p610_p12 = por %p609_p13, %p608_p10 }
  0x1f   : > { %p611_p1 = pnand %p610_p12, %p604_p5 }
  0x21   : > { %614 = shalt.err (!%p611_p1)
}
  0x22   : > { %s615_s5 = scalar_lea.vmem %s823_s13, 768  ;;  %s714_s7 = smov [#allocation2]  }
  0x23   : > { %p616_p2 = scmp.ne.s32.totalorder %s823_s13, %s615_s5  ;;  %s620_s9 = sshll.u32 %s714_s7, 4  ;;  %s621_s9 = int_to_ptr.vmem [resolvable:$false] %s620_s9 }
  0x24   : > { %s622_s10 = scalar_lea.vmem %s621_s9, 1536  ;;  %p623_p9 = scmp.lt.s32.totalorder %s823_s13, %s621_s9 }
  0x25   : > { %p618_p4 = pnand %p616_p2, %p602_p3  ;;  %p624_p6 = scmp.lt.s32.totalorder %s622_s10, %s615_s5 }
  0x27   : > { %p619_p11 = pneg %p618_p4  ;;  %p625_p7 = por %p624_p6, %p623_p9 }
  0x29   : > { %p626_p10 = pnand %p625_p7, %p619_p11 }
  0x2b   : > { %629 = shalt.err (!%p626_p10)
}
  0x2c   : > { %s715_s12 = smov 256   ;;  %s716_s21 = smov 16  }
  0x2d   : > { %514 = dma.hbm_to_vmem [thread:$0]  (!%p814_p0), %s821_s11, 768, %s823_s13, %s826_s14, %s715_s12, %s715_s12, %s716_s21  }
  0x2e   : > { %p210_p12 = scmp.lt.s32.totalorder %s712_s20, 3  ;;  %p1006_p1 = scmp.ge.s32.totalorder %s712_s20, 1 }
  0x30   : > { %p211_p3 = pnand %p1006_p1, %p210_p12 }
  0x31   : > { %s858_s22 = sand.u32 (!%p211_p3), 1, %s696_s16  }
  0x32   : > { %214 = sbr.rel (%p211_p3) target bundleno = 242 (0xf2), region = 36  ;;  %s217_s25 = scalar_lea.sflag (!%p211_p3), [#allocation3], %s858_s22 }
  0x33   : > { %s505_s24 = smul.u32 (!%p211_p3), 48, %s858_s22 }
  0x35   : > { %s864_s26 = scalar_lea.vmem (!%p211_p3), [#allocation2], %s505_s24 }
  0x39   : > { %683 = dma.done.wait (%p793_p8), %s217_s25, 768  }
  0x3a   : > { %685 = vsyncadd (%p793_p8), %s217_s25, 4294966528  ;;  %v717_v0 = vmov 0   ;;  %v266_v1 = vld [vmem:[%s996_s1 + $0x10] sm:$0xff]  ;;  %v264_v2 = vld [vmem:[%s996_s1] sm:$0xff]  ;;  %s249_s27 = scalar_lea.vmem [#allocation5], %s505_s24  ;;  %s506_s12 = smul.u32 768, %s704_s18 }
  0x3b   : > { %575 = vset.pattern.permute.xlu1 %v717_v0  ;;  %574 = vset.pattern.permute.xlu0 %v717_v0  ;;  %vm269_vm0 = vcmp.gt.f32.partialorder %v266_v1, 0.5  ;;  %vm267_vm1 = vcmp.gt.f32.partialorder %v264_v2, 0.5  ;;  %v265_v3 = vld [vmem:[%s996_s1 + $0x8] sm:$0xff]  ;;  %v333_v6 = vld [vmem:[%s995_s0] sm:$0xff]  ;;  %v335_v8 = vld [vmem:[%s995_s0 + $0x10] sm:$0xff]  ;;  %s391_s7 = sshll.u32 %s249_s27, 4  ;;  %s941_s7 = int_to_ptr.vmem [resolvable:$true] %s391_s7 }
  0x3c   : > { %v278_v4 = vsel %vm269_vm0, 1, %v717_v0  ;;  %v276_v5 = vsel %vm267_vm1, 1, %v717_v0  ;;  %vm268_vm2 = vcmp.gt.f32.partialorder %v265_v3, 0.5  ;;  %v334_v9 = vld [vmem:[%s995_s0 + $0x8] sm:$0xff]  ;;  %v263_v11 = vld [vmem:[%s864_s26 + $0x28] sm:$0xff]  ;;  %v261_v19 = vld [vmem:[%s864_s26 + $0x18] sm:$0xff] }
  0x3d   : > { %286 = vperm.xlu1 %575, %v278_v4   ;;  %280 = vperm.xlu0 %574, %v276_v5   ;;  %v277_v7 = vsel %vm268_vm2, 1, %v717_v0  ;;  %v262_v10 = vld [vmem:[%s864_s26 + $0x20] sm:$0xff]  ;;  %v259_v13 = vld [vmem:[%s864_s26 + $0x8] sm:$0xff]  ;;  %v275_v15 = vsub.f32 0.0, %v263_v11  ;;  %v260_v18 = vld [vmem:[%s864_s26 + $0x10] sm:$0xff]  ;;  %v273_v23 = vsub.f32 0.0, %v261_v19 }
  0x3e   : > { %v258_v12 = vld [vmem:[%s864_s26] sm:$0xff]  ;;  %v274_v14 = vsub.f32 0.0, %v262_v10  ;;  %v271_v17 = vsub.f32 0.0, %v259_v13  ;;  %v272_v22 = vsub.f32 0.0, %v260_v18  ;;  %v361_v52 = vld [vmem:[%s997_s2 + $0x20] sm:$0xff]  ;;  %s946_s26 = scalar_lea.hbm %s999_s4, %s506_s12  ;;  %s376_s8 = scalar_lea.sflag [#allocation4], %s858_s22 }
  0x3f   : > { %v270_v16 = vsub.f32 0.0, %v258_v12  ;;  %v362_v56 = vld [vmem:[%s997_s2 + $0x28] sm:$0xff]  ;;  %v357_v60 = vld [vmem:[%s997_s2] sm:$0xff]  ;;  %s630_s11 = scalar_lea.vmem %s941_s7, 768  ;;  %p1007_p9 = scmp.ne.s32.totalorder %s1003_s28, 0 }
  0x40   : > { %v358_v0 = vld [vmem:[%s997_s2 + $0x8] sm:$0xff]  ;;  %p631_p8 = scmp.ne.s32.totalorder %s941_s7, %s630_s11  ;;  %s718_s13 = smov [#allocation5]  }
  0x41   : > { %338 = vperm.xlu1 %575, %v333_v6   ;;  %283 = vperm.xlu0 %574, %v277_v7   ;;  %v359_v7 = vld [vmem:[%s997_s2 + $0x10] sm:$0xff]  ;;  %s634_s14 = sshll.u32 %s718_s13, 4  ;;  %s635_s14 = int_to_ptr.vmem [resolvable:$false] %s634_s14 }
  0x42   : > { %p632_p11 = pnand %p631_p8, %p1007_p9  ;;  %s636_s6 = scalar_lea.vmem %s635_s14, 1536 }
  0x43   : > { %p637_p5 = scmp.lt.s32.totalorder %s941_s7, %s635_s14  ;;  %p638_p13 = scmp.lt.s32.totalorder %s636_s6, %s630_s11 }
  0x44   : > { %p633_p0 = pneg %p632_p11 }
  0x45   : > { %348 = vperm.xlu1 %575, %v335_v8   ;;  %343 = vperm.xlu0 %574, %v334_v9   ;;  %p639_p2 = por %p638_p13, %p637_p5 }
  0x47   : > { %p640_p4 = pnand %p639_p2, %p633_p0 }
  0xbc   : > { %v287_v20 = vpop.permute.xlu1 %286  ;;  %v894_v21 = vpop.permute.xlu0 %280 }
  0xbd   : > { %vm290_vm3 = vcmp.eq.s32.totalorder %v287_v20, 1  ;;  %vm288_vm4 = vcmp.eq.s32.totalorder %v894_v21, 1 }
  0xbe   : > { %v295_v24 = vsel %vm290_vm3, %v262_v10, %v274_v14  ;;  %v296_v25 = vsel %vm290_vm3, %v263_v11, %v275_v15  ;;  %v291_v26 = vsel %vm288_vm4, %v258_v12, %v270_v16  ;;  %v292_v27 = vsel %vm288_vm4, %v259_v13, %v271_v17  ;;  %v360_v11 = vld [vmem:[%s997_s2 + $0x18] sm:$0xff] }
  0xbf   : > { %v305_v28 = vmul.f32 1.442695, %v295_v24  ;;  %v307_v29 = vmul.f32 1.442695, %v296_v25  ;;  %v297_v30 = vmul.f32 1.442695, %v291_v26 }
  0xc0   : > { %v299_v31 = vmul.f32 1.442695, %v292_v27  ;;  %v903_v32 = vpop.permute.xlu0 %283  ;;  %v339_v49 = vpop.permute.xlu1 %338 }
  0xc1   : > { %576 = vpow2.f32 %v305_v28  ;;  %vm289_vm5 = vcmp.eq.s32.totalorder %v903_v32, 1 }
  0xc2   : > { %578 = vpow2.f32 %v307_v29  ;;  %v293_v33 = vsel %vm289_vm5, %v260_v18, %v272_v22  ;;  %v294_v34 = vsel %vm289_vm5, %v261_v19, %v273_v23 }
  0xc3   : > { %580 = vpow2.f32 %v297_v30  ;;  %v301_v35 = vmul.f32 1.442695, %v293_v33  ;;  %v303_v36 = vmul.f32 1.442695, %v294_v34 }
  0xc4   : > { %582 = vpow2.f32 %v299_v31  ;;  %v349_v53 = vpop.permute.xlu1 %348  ;;  %v344_v8 = vpop.permute.xlu0 %343 }
  0xc5   : > { %584 = vpow2.f32 %v301_v35 }
  0xc6   : > { %586 = vpow2.f32 %v303_v36 }
  0xcb   : > { %v577_v37 = vpop.eup %576 }
  0xcc   : > { %v579_v38 = vpop.eup %578  ;;  %v313_v39 = vadd.f32 1.0, %v577_v37 }
  0xcd   : > { %v581_v40 = vpop.eup %580  ;;  %v314_v41 = vadd.f32 1.0, %v579_v38 }
  0xce   : > { %v583_v42 = vpop.eup %582  ;;  %588 = vrcp.f32 %v313_v39  ;;  %v309_v43 = vadd.f32 1.0, %v581_v40 }
  0xcf   : > { %v585_v44 = vpop.eup %584  ;;  %590 = vrcp.f32 %v314_v41  ;;  %v310_v45 = vadd.f32 1.0, %v583_v42 }
  0xd0   : > { %v587_v46 = vpop.eup %586  ;;  %592 = vrcp.f32 %v309_v43  ;;  %v311_v47 = vadd.f32 1.0, %v585_v44 }
  0xd1   : > { %594 = vrcp.f32 %v310_v45  ;;  %v312_v48 = vadd.f32 1.0, %v587_v46 }
  0xd2   : > { %596 = vrcp.f32 %v311_v47 }
  0xd3   : > { %598 = vrcp.f32 %v312_v48 }
  0xd8   : > { %v589_v50 = vpop.eup %588 }
  0xd9   : > { %v591_v51 = vpop.eup %590  ;;  %v331_v54 = vsel %vm290_vm3, %v577_v37, %v589_v50 }
  0xda   : > { %v593_v55 = vpop.eup %592  ;;  %v332_v57 = vsel %vm290_vm3, %v579_v38, %v591_v51  ;;  %v355_v58 = vmul.f32 %v349_v53, %v331_v54 }
  0xdb   : > { %v595_v59 = vpop.eup %594  ;;  %v327_v61 = vsel %vm288_vm4, %v581_v40, %v593_v55  ;;  %v356_v62 = vmul.f32 %v349_v53, %v332_v57 }
  0xdc   : > { %v597_v63 = vpop.eup %596  ;;  %v328_v1 = vsel %vm288_vm4, %v583_v42, %v595_v59  ;;  %v351_v2 = vmul.f32 %v339_v49, %v327_v61  ;;  %v367_v3 = vadd.f32 %v361_v52, %v355_v58 }
  0xdd   : > { %v599_v4 = vpop.eup %598  ;;  %v352_v5 = vmul.f32 %v339_v49, %v328_v1  ;;  %v368_v6 = vadd.f32 %v362_v56, %v356_v62  ;;  %v329_v9 = vsel %vm289_vm5, %v585_v44, %v597_v63 }
  0xde   : > { %v363_v10 = vadd.f32 %v357_v60, %v351_v2  ;;  %373 = vst [vmem:[%s249_s27 + $0x20] sm:$0xff] %v367_v3  ;;  %v330_v12 = vsel %vm289_vm5, %v587_v46, %v599_v4  ;;  %v353_v13 = vmul.f32 %v344_v8, %v329_v9 }
  0xdf   : > { %v364_v14 = vadd.f32 %v358_v0, %v352_v5  ;;  %374 = vst [vmem:[%s249_s27 + $0x28] sm:$0xff] %v368_v6  ;;  %v354_v15 = vmul.f32 %v344_v8, %v330_v12 }
  0xe0   : > { %369 = vst [vmem:[%s249_s27] sm:$0xff] %v363_v10  ;;  %v365_v16 = vadd.f32 %v359_v7, %v353_v13 }
  0xe1   : > { %370 = vst [vmem:[%s249_s27 + $0x8] sm:$0xff] %v364_v14  ;;  %v366_v17 = vadd.f32 %v360_v11, %v354_v15 }
  0xe2   : > { %371 = vst [vmem:[%s249_s27 + $0x10] sm:$0xff] %v365_v16 }
  0xe3   : > { %372 = vst [vmem:[%s249_s27 + $0x18] sm:$0xff] %v366_v17 }
  0xe4   : > { %643 = shalt.err (!%p640_p4)
}
  0xe5   : > { %s644_s5 = scalar_lea.hbm %s946_s26, 768  ;;  %s648_s10 = scalar_lea.hbm %s999_s4, 1536 }
  0xe6   : > { %p645_p6 = scmp.ne.s32.totalorder %s946_s26, %s644_s5  ;;  %p649_p12 = scmp.lt.u32.totalorder %s946_s26, %s999_s4 }
  0xe7   : > { %p650_p1 = scmp.lt.u32.totalorder %s648_s10, %s644_s5  ;;  %p652_p8 = scmp.lt.u32.totalorder %s644_s5, %s946_s26 }
  0xe8   : > { %p646_p7 = pnand %p645_p6, %p1007_p9 }
  0xe9   : > { %p651_p3 = por %p650_p1, %p649_p12 }
  0xea   : > { %p647_p10 = pneg %p646_p7 }
  0xeb   : > { %p653_p11 = por %p652_p8, %p651_p3 }
  0xed   : > { %p654_p0 = pnand %p653_p11, %p647_p10 }
  0xef   : > { %657 = shalt.err (!%p654_p0)
}
  0xf0   : > { %s719_s21 = smov 256   ;;  %s720_s18 = smov 16  }
  0xf1   : > { %509 = dma.vmem_to_hbm [thread:$0]  (%p1007_p9), %s941_s7, 768, %s946_s26, %s376_s8, %s719_s21, %s719_s21, %s720_s18  }
  0xf2 PF: > { %s406_s25 = sand.u32 1, %s692_s15   ;;  %p1008_p5 = scmp.ne.s32.totalorder %s1004_s30, 0 }
  0xf3   : > { %p1009_p13 = scmp.ge.s32.totalorder %s712_s20, 2  ;;  %s407_s11 = scalar_lea.sflag [#allocation4], %s406_s25 }
  0xf5   : > { %p516_p2 = pnand %p1009_p13, %p1008_p5 }
  0xf7   : > { %687 = dma.done.wait (!%p516_p2), %s407_s11, 768  }
  0xf8   : > { %689 = vsyncadd (!%p516_p2), %s407_s11, 4294966528  ;;  %s20_s20 = sadd.s32 1, %s712_s20   ;;  %s1010_s15 = smov %s696_s16 }
  0xf9   : > { %p17_p4 = scmp.ge.s32.totalorder %s20_s20, 4   ;;  %s1011_s16 = smov %s700_s17 }
  0xfa   : > { %s1012_s17 = smov %s802_s29  ;;  %s1013_s18 = smov %s708_s19 }
  0xfb   : > { %s1014_s19 = smov %s1016_s23  ;;  %19 = sbr.rel (!%p17_p4) target bundleno = 6 (0x6), region = 84 }
 0x102   :  { %412 = vsyncpa [#allocation3], 1 }
 0x103   :  { %414 = vsyncpa [#allocation3 + $0x1], 1 }
 0x104   :  { %415 = vsyncpa [#allocation4], 1 }
 0x105   :  { %417 = vsyncpa [#allocation4 + $0x1], 1 }

</bundles_post_ra>
